<compile_context>
chip_gen: v5e
topology: v5e:2x2
jax: 0.10.0
libtpu: 0.0.40
codegen_flags: <defaults>
</compile_context>

<pallas_src>
import functools

import jax
import jax.numpy as jnp
from jax.experimental import pallas as pl
from jax.experimental.pallas import tpu as pltpu


def _vmem_capacity_bytes():
    """Per-core VMEM capacity; conservative fallback (v7x per-TC = 64 MiB)."""
    try:
        cap = int(pltpu.get_tpu_info().vmem_capacity_bytes)
        if cap > 0:
            return cap
    except Exception:
        pass
    return 64 << 20


def _default_num_core_splits():
    """Use the 2-way row split only where it shards across TensorCores (v7x)."""
    try:
        kind = jax.devices()[0].device_kind.lower()
        if "v7" in kind:
            return 2
    except Exception:
        pass
    return 1


def _pick_tile_n(N, F, vmem_bytes):
    """Row-tile from a VMEM budget: multi-MiB tiles amortize per-step overhead."""
    n_rounded = ((N + 7) // 8) * 8
    # Per-row cost: double-buffered x row + ~8 lane-padded (row, 128) f32 temps.
    per_row = 2 * F * 4 + 8 * 128 * 4
    budget = min(vmem_bytes // 2, 24 << 20)
    tile = budget // per_row
    tile = max(512, min(tile, 8192))
    tile = min(tile, n_rounded)
    return max(8, (tile // 8) * 8)


def _intra_partial_kernel(mm_ref, mt_ref, x_ref, out_ref, acc_ref, *,
                          n_valid, tile_n, tiles_per_split, masked):
    c = pl.program_id(0)          # core split ("parallel"; shards TCs on v7x)
    t = pl.program_id(1)          # row tile within split ("arbitrary" reduction)

    @pl.when(t == 0)
    def _zero():
        acc_ref[...] = jnp.zeros_like(acc_ref)

    x = x_ref[...]                                        # (tile_n, F) f32
    mm = mm_ref[...]                                      # (1, K) |m_k|^2 (hoisted)

    # Pairwise squared distances via the MXU: d2 = |x|^2 + |m|^2 - 2 x.m^T.
    xx = jnp.sum(x * x, axis=1, keepdims=True)            # (tile_n, 1)
    xm = jnp.dot(x, mt_ref[...],                          # (tile_n, K), m pre-transposed
                 preferred_element_type=jnp.float32,
                 precision=jax.lax.Precision.HIGHEST)
    d2 = jnp.maximum(xx + mm - 2.0 * xm, 0.0)             # clamp cancellation
    d = jnp.sqrt(d2)

    # p = softmax(-d^2) over clusters (numerically stable, exact division).
    logits = -d2
    logits = logits - jnp.max(logits, axis=1, keepdims=True)
    e = jnp.exp(logits)
    p = e / jnp.sum(e, axis=1, keepdims=True)

    contrib = p * d                                        # (tile_n, K)
    if masked:  # static: only when ragged rows / phantom tiles exist
        # Mask garbage rows (partial edge block OOB data, phantom split tiles)
        # BEFORE any cross-row reduction so NaN/Inf cannot escape.
        row0 = (c * tiles_per_split + t) * tile_n
        rows = row0 + jax.lax.broadcasted_iota(jnp.int32, (tile_n, 1), 0)
        contrib = jnp.where(rows < n_valid, contrib, 0.0)

    # Lane-kept accumulation; cross-lane reduce over K is deferred to the flush.
    acc_ref[...] += jnp.sum(contrib, axis=0, keepdims=True)   # (1, K)

    # Flush this split's partial sum into a lane-dense (1, 128) output row.
    @pl.when(t == pl.num_programs(1) - 1)
    def _flush():
        lane = jax.lax.broadcasted_iota(jnp.int32, (1, 128), 1)
        out_ref[...] = jnp.where(lane == 0, jnp.sum(acc_ref[...]), 0.0)


def loss_unsupervised_weighted_sum(x, m, lamb=1.0, tile_n=None,
                                   num_core_splits=None):
    """x: (N, F), m: (K, F) -> (total, intra, inter) scalars (float32)."""
    x = jnp.asarray(x, jnp.float32)
    m = jnp.asarray(m, jnp.float32)
    N, F = x.shape
    K, F2 = m.shape
    assert F == F2

    vmem_cap = _vmem_capacity_bytes()
    if tile_n is None:
        tile_n = _pick_tile_n(N, F, vmem_cap)
    tile_n = max(8, (min(tile_n, ((N + 7) // 8) * 8) // 8) * 8)

    n_tiles = pl.cdiv(N, tile_n)
    if num_core_splits is None:
        num_core_splits = _default_num_core_splits()
    num_core_splits = max(1, min(int(num_core_splits), n_tiles))
    tiles_per_split = pl.cdiv(n_tiles, num_core_splits)

    # Ragged rows and/or phantom tiles from split imbalance -> in-kernel mask.
    masked = (num_core_splits * tiles_per_split * tile_n != N)

    # m-derived quantities hoisted out of the per-step body:
    mt = m.T                                      # (F, K) feeds the MXU directly
    mm = jnp.sum(m * m, axis=1)[None, :]          # (1, K) lane-oriented |m_k|^2

    if num_core_splits * tiles_per_split > n_tiles:
        # Phantom tiles: clamp the block index so the DMA stays in bounds; the
        # unclamped row offset makes the in-kernel mask zero them out.
        x_index = lambda c, t: (jnp.minimum(c * tiles_per_split + t, n_tiles - 1), 0)
    else:
        x_index = lambda c, t: (c * tiles_per_split + t, 0)

    est_vmem = (2 * tile_n * F * 4            # double-buffered x tile
                + 10 * tile_n * 128 * 4       # lane-padded (tile_n, K) temporaries
                + 2 * K * F * 4 + (1 << 20))
    vmem_limit = int(min(vmem_cap * 3 // 4,
                         max(32 << 20, est_vmem + (8 << 20))))

    cost = pl.CostEstimate(
        flops=int(2 * N * F * K + 12 * N * K + 3 * N * F),
        transcendentals=int(2 * N * K),
        bytes_accessed=int(N * F * 4 + 2 * K * F * 4 + num_core_splits * 128 * 4))

    partials = pl.pallas_call(
        functools.partial(
            _intra_partial_kernel, n_valid=N, tile_n=tile_n,
            tiles_per_split=tiles_per_split, masked=masked),
        out_shape=jax.ShapeDtypeStruct((num_core_splits, 128), jnp.float32),
        grid=(num_core_splits, tiles_per_split),
        in_specs=[pl.BlockSpec((1, K), lambda c, t: (0, 0)),
                  pl.BlockSpec((F, K), lambda c, t: (0, 0)),
                  pl.BlockSpec((tile_n, F), x_index)],
        out_specs=pl.BlockSpec((1, 128), lambda c, t: (c, 0)),
        scratch_shapes=[pltpu.VMEM((1, K), jnp.float32)],
        compiler_params=pltpu.CompilerParams(
            dimension_semantics=("parallel", "arbitrary"),
            vmem_limit_bytes=vmem_limit),
        cost_estimate=cost,
    )(mm, mt, x)

    intra = jnp.sum(partials[:, 0]) * (1.0 / N)

    # inter depends only on m (K x F, tiny): hoisted out of the kernel into
    # plain JAX so it is not recomputed on every grid step.
    mbar = jnp.mean(m, axis=0)
    d2b = jnp.sum((mbar[None, :] - m) ** 2, axis=1)
    db = jnp.sqrt(d2b)
    pb = jax.nn.softmax(-d2b)
    inter = jnp.sum(pb * db)

    total = intra - lamb * inter
    return total, intra, inter


def init_cluster_centers(key, num_clusters, feature_size):
    """Deterministic re-implementation of the module's __init__ for self.m."""
    m = jax.random.uniform(key, (num_clusters, feature_size),
                           dtype=jnp.float32)              # np.random.rand analogue
    if num_clusters < feature_size:
        _, _, vh = jnp.linalg.svd(m, full_matrices=False)
        m = vh
    m = m / jnp.linalg.norm(m, axis=1, keepdims=True)
    return m.astype(jnp.float32)


def _reference(x, m, lamb):
    d = jnp.sqrt(jnp.sum((x[:, None, :] - m[None, :, :]) ** 2, axis=-1))
    p = jax.nn.softmax(-d ** 2, axis=1)
    intra = jnp.mean(jnp.sum(p * d, axis=1))
    mbar = jnp.mean(m, axis=0)
    db = jnp.sqrt(jnp.sum((mbar[None, :] - m) ** 2, axis=-1))
    pb = jax.nn.softmax(-db ** 2)
    inter = jnp.sum(pb * db)
    return intra - lamb * inter, intra, inter


if __name__ == "__main__":
    key = jax.random.PRNGKey(0)
    k_m, k_x1, k_x2 = jax.random.split(key, 3)

    num_clusters, feature_size, lamb = 4, 128, 1.0
    m = init_cluster_centers(k_m, num_clusters, feature_size)   # (4, 128)

    def check(x, tile_n=None, num_core_splits=None):
        got = loss_unsupervised_weighted_sum(
            x, m, lamb=lamb, tile_n=tile_n, num_core_splits=num_core_splits)
        got = jax.block_until_ready(got)
        want = _reference(x, m, lamb)
        for g, w in zip(got, want):
            assert jnp.allclose(g, w, rtol=3e-3, atol=3e-4), (g, w)

    # Small shape matching the module docstring (N samples of 128 features).
    x_small = jax.random.normal(k_x1, (8, feature_size), dtype=jnp.float32)
    check(x_small)

    # Ragged N: exercises multi-tile streaming + partial-edge-block row masking
    # (no host-side jnp.pad of x).
    x_big = jax.random.normal(k_x2, (600, feature_size), dtype=jnp.float32)
    check(x_big, tile_n=128)

    # Forced 2-way core split (v7x path): exercises split imbalance / clamped
    # phantom tiles; harmless serial outer loop on single-core v5e/v6e.
    check(x_big, tile_n=256, num_core_splits=2)

    print("KERNEL_OK")
</pallas_src>

<mosaic_0001>
module attributes {stable_mosaic.version = 11 : i64} {
  func.func @_intra_partial_kernel(%arg0: i32, %arg1: i32, %arg2: memref<1x4xf32, #tpu.memory_space<vmem>>, %arg3: memref<128x4xf32, #tpu.memory_space<vmem>>, %arg4: memref<8x128xf32, #tpu.memory_space<vmem>>, %arg5: memref<1x128xf32, #tpu.memory_space<vmem>>, %arg6: memref<1x4xf32, #tpu.memory_space<vmem>>) attributes {dimension_semantics = [#tpu.dimension_semantics<parallel>, #tpu.dimension_semantics<arbitrary>], iteration_bounds = array<i64: 1, 1>, scalar_prefetch = 0 : i64, scratch_operands = 1 : i64, tpu.core_type = #tpu.core_type<tc>, window_params = [{pipeline_mode = #tpu.pipeline_mode<synchronous>, transform_indices = @transform_0, window_bounds = array<i64: 1, 4>}, {pipeline_mode = #tpu.pipeline_mode<synchronous>, transform_indices = @transform_1, window_bounds = array<i64: 128, 4>}, {transform_indices = @transform_2, window_bounds = array<i64: 8, 128>}, {transform_indices = @transform_3, window_bounds = array<i64: 1, 128>}]} {
    %c0_i32 = arith.constant 0 : i32
    %0 = arith.cmpi eq, %arg1, %c0_i32 : i32
    %1 = arith.extui %0 : i1 to i32
    %c0_i32_0 = arith.constant 0 : i32
    %2 = arith.cmpi ne, %1, %c0_i32_0 : i32
    scf.if %2 {
      %cst_19 = arith.constant 0.000000e+00 : f32
      %39 = vector.broadcast %cst_19 : f32 to vector<1x4xf32>
      %c0_20 = arith.constant 0 : index
      %c0_21 = arith.constant 0 : index
      %40 = vector.load %arg6[%c0_20, %c0_21] : memref<1x4xf32, #tpu.memory_space<vmem>>, vector<1x4xf32>
      tpu.vector_store %arg6[%c0_20, %c0_21], %39 {strides = array<i32>} : memref<1x4xf32, #tpu.memory_space<vmem>>, vector<1x4xf32>,
    } else {
    }
    %c0 = arith.constant 0 : index
    %c0_1 = arith.constant 0 : index
    %3 = vector.load %arg4[%c0, %c0_1] : memref<8x128xf32, #tpu.memory_space<vmem>>, vector<8x128xf32>
    %c0_2 = arith.constant 0 : index
    %c0_3 = arith.constant 0 : index
    %4 = vector.load %arg2[%c0_2, %c0_3] : memref<1x4xf32, #tpu.memory_space<vmem>>, vector<1x4xf32>
    %5 = arith.mulf %3, %3 : vector<8x128xf32>
    %cst = arith.constant dense<0.000000e+00> : vector<8xf32>
    %6 = vector.multi_reduction <add>, %5, %cst [1] : vector<8x128xf32> to vector<8xf32>
    %7 = vector.shape_cast %6 : vector<8xf32> to vector<8x1xf32>
    %c0_4 = arith.constant 0 : index
    %c0_5 = arith.constant 0 : index
    %8 = vector.load %arg3[%c0_4, %c0_5] : memref<128x4xf32, #tpu.memory_space<vmem>>, vector<128x4xf32>
    %cst_6 = arith.constant dense<0.000000e+00> : vector<8x4xf32>
    %9 = tpu.matmul %3, %8, %cst_6 {dimension_numbers = #tpu.dot_dimension_numbers<[1], [0], [0], [1], [0, 0, 1, 1], [], []>, precision = #tpu.contract_precision<fp32>} : vector<8x128xf32>, vector<128x4xf32>, vector<8x4xf32> -> vector<8x4xf32>
    %10 = vector.broadcast %7 : vector<8x1xf32> to vector<8x4xf32>
    %11 = vector.broadcast %4 : vector<1x4xf32> to vector<8x4xf32>
    %12 = arith.addf %10, %11 : vector<8x4xf32>
    %cst_7 = arith.constant 2.000000e+00 : f32
    %13 = vector.broadcast %cst_7 : f32 to vector<8x4xf32>
    %14 = arith.mulf %13, %9 : vector<8x4xf32>
    %15 = arith.subf %12, %14 : vector<8x4xf32>
    %cst_8 = arith.constant 0.000000e+00 : f32
    %16 = vector.broadcast %cst_8 : f32 to vector<8x4xf32>
    %17 = arith.maximumf %15, %16 : vector<8x4xf32>
    %18 = math.sqrt %17 : vector<8x4xf32>
    %cst_9 = arith.constant 0.000000e+00 : f32
    %19 = vector.broadcast %cst_9 : f32 to vector<8x4xf32>
    %20 = arith.subf %19, %17 : vector<8x4xf32>
    %cst_10 = arith.constant dense<0xFF800000> : vector<8xf32>
    %21 = vector.multi_reduction <maximumf>, %20, %cst_10 [1] : vector<8x4xf32> to vector<8xf32>
    %22 = vector.shape_cast %21 : vector<8xf32> to vector<8x1xf32>
    %23 = vector.broadcast %22 : vector<8x1xf32> to vector<8x4xf32>
    %24 = arith.subf %20, %23 : vector<8x4xf32>
    %25 = math.exp %24 : vector<8x4xf32>
    %cst_11 = arith.constant dense<0.000000e+00> : vector<8xf32>
    %26 = vector.multi_reduction <add>, %25, %cst_11 [1] : vector<8x4xf32> to vector<8xf32>
    %27 = vector.shape_cast %26 : vector<8xf32> to vector<8x1xf32>
    %28 = vector.broadcast %27 : vector<8x1xf32> to vector<8x4xf32>
    %29 = arith.divf %25, %28 : vector<8x4xf32>
    %30 = arith.mulf %29, %18 : vector<8x4xf32>
    %c0_12 = arith.constant 0 : index
    %c0_13 = arith.constant 0 : index
    %31 = vector.load %arg6[%c0_12, %c0_13] : memref<1x4xf32, #tpu.memory_space<vmem>>, vector<1x4xf32>
    %cst_14 = arith.constant dense<0.000000e+00> : vector<4xf32>
    %32 = vector.multi_reduction <add>, %30, %cst_14 [0] : vector<8x4xf32> to vector<4xf32>
    %33 = vector.shape_cast %32 : vector<4xf32> to vector<1x4xf32>
    %34 = arith.addf %31, %33 : vector<1x4xf32>
    %c0_15 = arith.constant 0 : index
    %c0_16 = arith.constant 0 : index
    %35 = vector.load %arg6[%c0_15, %c0_16] : memref<1x4xf32, #tpu.memory_space<vmem>>, vector<1x4xf32>
    tpu.vector_store %arg6[%c0_15, %c0_16], %34 {strides = array<i32>} : memref<1x4xf32, #tpu.memory_space<vmem>>, vector<1x4xf32>,
    %c0_i32_17 = arith.constant 0 : i32
    %36 = arith.cmpi eq, %arg1, %c0_i32_17 : i32
    %37 = arith.extui %36 : i1 to i32
    %c0_i32_18 = arith.constant 0 : i32
    %38 = arith.cmpi ne, %37, %c0_i32_18 : i32
    scf.if %38 {
      %39 = tpu.iota {dimensions = array<i32: 1>} : vector<1x128xi32>
      %c0_i32_19 = arith.constant 0 : i32
      %40 = vector.broadcast %c0_i32_19 : i32 to vector<1x128xi32>
      %41 = arith.cmpi eq, %39, %40 : vector<1x128xi32>
      %c0_20 = arith.constant 0 : index
      %c0_21 = arith.constant 0 : index
      %42 = vector.load %arg6[%c0_20, %c0_21] : memref<1x4xf32, #tpu.memory_space<vmem>>, vector<1x4xf32>
      %43 = vector.shape_cast %42 : vector<1x4xf32> to vector<1x1x4xf32>
      %cst_22 = arith.constant dense<0.000000e+00> : vector<1xf32>
      %44 = vector.multi_reduction <add>, %43, %cst_22 [1, 2] : vector<1x1x4xf32> to vector<1xf32>
      %45 = vector.shape_cast %44 : vector<1xf32> to vector<1x1x1xf32>
      %46 = vector.extract %45[0, 0, 0] : f32 from vector<1x1x1xf32>
      %cst_23 = arith.constant 0.000000e+00 : f32
      %47 = vector.broadcast %46 : f32 to vector<1x128xf32>
      %48 = vector.broadcast %cst_23 : f32 to vector<1x128xf32>
      %49 = arith.select %41, %47, %48 : vector<1x128xi1>, vector<1x128xf32>
      %c0_24 = arith.constant 0 : index
      %c0_25 = arith.constant 0 : index
      %50 = vector.load %arg5[%c0_24, %c0_25] : memref<1x128xf32, #tpu.memory_space<vmem>>, vector<1x128xf32>
      tpu.vector_store %arg5[%c0_24, %c0_25], %49 {strides = array<i32>} : memref<1x128xf32, #tpu.memory_space<vmem>>, vector<1x128xf32>,
    } else {
    }
    return
  }
  func.func @transform_0(%arg0: i32, %arg1: i32) -> (i32, i32) {
    %c0_i32 = arith.constant 0 : i32
    %c0_i32_0 = arith.constant 0 : i32
    %c0_i32_1 = arith.constant 0 : i32
    return %c0_i32, %c0_i32_0 : i32, i32
  }
  func.func @transform_1(%arg0: i32, %arg1: i32) -> (i32, i32) {
    %c0_i32 = arith.constant 0 : i32
    %c0_i32_0 = arith.constant 0 : i32
    %c0_i32_1 = arith.constant 0 : i32
    return %c0_i32, %c0_i32_0 : i32, i32
  }
  func.func @transform_2(%arg0: i32, %arg1: i32) -> (i32, i32) {
    %c1_i32 = arith.constant 1 : i32
    %0 = arith.muli %arg0, %c1_i32 : i32
    %1 = arith.addi %0, %arg1 : i32
    %c0_i32 = arith.constant 0 : i32
    %c0_i32_0 = arith.constant 0 : i32
    return %1, %c0_i32 : i32, i32
  }
  func.func @transform_3(%arg0: i32, %arg1: i32) -> (i32, i32) {
    %c0_i32 = arith.constant 0 : i32
    %c0_i32_0 = arith.constant 0 : i32
    return %arg0, %c0_i32 : i32, i32
  }
}

</mosaic_0001>

<bundles_post_ra>
// kernel: tpu_custom_call.1
= control target key start
LH: loop header
LB: loop body
LE: loop exit
PB: predicated region body
PF: predicated region fallthrough
CT: control target
= control target key end

     0   :  { %s865_s0 = inlined_call_operand.vmem [shape: f32[1,4], index: 0, kind: input, shape index: {}]   ;;  %s866_s1 = inlined_call_operand.vmem [shape: f32[128,4], index: 1, kind: input, shape index: {}]   ;;  %s867_s2 = inlined_call_operand.vmem [shape: f32[8,128], index: 2, kind: input, shape index: {}]   ;;  %s868_s3 = inlined_call_operand.hbm [shape: f32[1,128], index: 3, kind: output, shape index: {}]  }
   0x1   :  { %v58_v0 = vld [vmem:[%s866_s1 + $0x78] sm:$0xff]  ;;  %v57_v1 = vld [vmem:[%s866_s1 + $0x70] sm:$0xff]  ;;  %v56_v2 = vld [vmem:[%s866_s1 + $0x68] sm:$0xff] }
   0x2   :  { %v567_v3 = vand.u32 4294901760, %v58_v0  ;;  %v569_v4 = vand.u32 4294901760, %v57_v1  ;;  %v571_v5 = vand.u32 4294901760, %v56_v2  ;;  %v55_v6 = vld [vmem:[%s866_s1 + $0x60] sm:$0xff]  ;;  %v54_v7 = vld [vmem:[%s866_s1 + $0x58] sm:$0xff]  ;;  %v53_v8 = vld [vmem:[%s866_s1 + $0x50] sm:$0xff] }
   0x3   :  { %v582_v9 = vand.u32 4294901760, %v55_v6  ;;  %v584_v10 = vand.u32 4294901760, %v54_v7  ;;  %v586_v11 = vand.u32 4294901760, %v53_v8  ;;  %v52_v12 = vld [vmem:[%s866_s1 + $0x48] sm:$0xff]  ;;  %v51_v13 = vld [vmem:[%s866_s1 + $0x40] sm:$0xff]  ;;  %v50_v18 = vld [vmem:[%s866_s1 + $0x38] sm:$0xff] }
   0x4   :  { %60 = vmatpush.msra.mxu0 %v567_v3  ;;  %v596_v14 = vsub.f32 %v58_v0, %v567_v3  ;;  %v599_v15 = vsub.f32 %v57_v1, %v569_v4  ;;  %v602_v16 = vsub.f32 %v56_v2, %v571_v5  ;;  %v604_v17 = vand.u32 4294901760, %v52_v12  ;;  %256 = vmatpush.msra.mxu3 %v567_v3  ;;  %v49_v26 = vld [vmem:[%s866_s1 + $0x30] sm:$0xff] }
   0x5   :  { %v611_v19 = vsub.f32 %v55_v6, %v582_v9  ;;  %v614_v20 = vsub.f32 %v54_v7, %v584_v10  ;;  %v617_v21 = vsub.f32 %v53_v8, %v586_v11  ;;  %v623_v25 = vand.u32 4294901760, %v51_v13 }
   0x6   :  { %62 = vmatpush.msra.mxu0 %v569_v4  ;;  %v102_v22 = vand.u32 4294901760, %v596_v14  ;;  %v108_v23 = vand.u32 4294901760, %v599_v15  ;;  %v114_v24 = vand.u32 4294901760, %v602_v16  ;;  %203 = vmatpush.msra.mxu2 %v596_v14  ;;  %v630_v28 = vand.u32 4294901760, %v50_v18 }
   0x7   :  { %v120_v27 = vand.u32 4294901760, %v611_v19  ;;  %v633_v29 = vsub.f32 %v52_v12, %v604_v17  ;;  %258 = vmatpush.msra.mxu3 %v569_v4  ;;  %v126_v33 = vand.u32 4294901760, %v614_v20 }
   0x8   :  { %64 = vmatpush.msra.mxu0 %v571_v5  ;;  %v103_v30 = vsub.f32 %v596_v14, %v102_v22  ;;  %v109_v31 = vsub.f32 %v599_v15, %v108_v23  ;;  %v115_v32 = vsub.f32 %v602_v16, %v114_v24  ;;  %206 = vmatpush.msra.mxu2 %v599_v15 }
   0x9   :  { %8 = vsyncpa [#allocation4], 0  ;;  %v132_v34 = vand.u32 4294901760, %v617_v21  ;;  %v649_v35 = vand.u32 4294901760, %v49_v26  ;;  %v48_v36 = vld [vmem:[%s866_s1 + $0x28] sm:$0xff]  ;;  %260 = vmatpush.msra.mxu3 %v571_v5  ;;  %v121_v39 = vsub.f32 %v611_v19, %v120_v27  ;;  %v660_v40 = vsub.f32 %v51_v13, %v623_v25  ;;  %v47_v42 = vld [vmem:[%s866_s1 + $0x20] sm:$0xff] }
   0xa   :  { %v104_v37 = vand.u32 4294901760, %v103_v30  ;;  %66 = vmatpush.msra.mxu0 %v582_v9  ;;  %v110_v38 = vand.u32 4294901760, %v109_v31  ;;  %209 = vmatpush.msra.mxu2 %v602_v16  ;;  %v138_v41 = vand.u32 4294901760, %v633_v29  ;;  %v116_v43 = vand.u32 4294901760, %v115_v32  ;;  %v46_v47 = vld [vmem:[%s866_s1 + $0x18] sm:$0xff]  ;;  %v45_v55 = vld [vmem:[%s866_s1 + $0x10] sm:$0xff] }
   0xb   :  { %262 = vmatpush.msra.mxu3 %v582_v9  ;;  %v127_v44 = vsub.f32 %v614_v20, %v126_v33  ;;  %v672_v45 = vand.u32 4294901760, %v48_v36  ;;  %v675_v46 = vsub.f32 %v50_v18, %v630_v28  ;;  %v133_v48 = vsub.f32 %v617_v21, %v132_v34  ;;  %v44_v60 = vld [vmem:[%s866_s1 + $0x8] sm:$0xff]  ;;  %v43_v1 = vld [vmem:[%s866_s1] sm:$0xff]  ;;  %s484_s22 = sshll.u32 %s868_s3, 4  ;;  %s485_s22 = int_to_ptr.hbm [resolvable:$true] %s484_s22 }
   0xc   :  { %105 = vmatpush.msra.mxu1 %v104_v37  ;;  %68 = vmatpush.msra.mxu0 %v584_v10  ;;  %v122_v49 = vand.u32 4294901760, %v121_v39  ;;  %v144_v50 = vand.u32 4294901760, %v660_v40  ;;  %v687_v51 = vand.u32 4294901760, %v47_v42  ;;  %v690_v52 = vsub.f32 %v49_v26, %v649_v35  ;;  %v733_v7 = vld [vmem:[%s867_s2] sm:$0xff] }
   0xd   :  { %212 = vmatpush.msra.mxu2 %v611_v19  ;;  %264 = vmatpush.msra.mxu3 %v584_v10  ;;  %v139_v53 = vsub.f32 %v633_v29, %v138_v41  ;;  %v695_v54 = vand.u32 4294901760, %v46_v47  ;;  %v128_v56 = vand.u32 4294901760, %v127_v44  ;;  %v150_v57 = vand.u32 4294901760, %v675_v46 }
   0xe   :  { %111 = vmatpush.msra.mxu1 %v110_v38  ;;  %70 = vmatpush.msra.mxu0 %v586_v11  ;;  %v705_v58 = vsub.f32 %v48_v36, %v672_v45  ;;  %v134_v59 = vand.u32 4294901760, %v133_v48  ;;  %v145_v61 = vsub.f32 %v660_v40, %v144_v50  ;;  %v156_v62 = vand.u32 4294901760, %v690_v52 }
   0xf   :  { %215 = vmatpush.msra.mxu2 %v614_v20  ;;  %266 = vmatpush.msra.mxu3 %v586_v11  ;;  %v717_v63 = vand.u32 4294901760, %v45_v55  ;;  %v720_v0 = vsub.f32 %v47_v42, %v687_v51  ;;  %v140_v2 = vand.u32 4294901760, %v139_v53  ;;  %v726_v6 = vsub.f32 %v46_v47, %v695_v54 }
  0x10   :  { %117 = vmatpush.msra.mxu1 %v116_v43  ;;  %72 = vmatpush.msra.mxu0 %v604_v17  ;;  %v151_v8 = vsub.f32 %v675_v46, %v150_v57  ;;  %v162_v12 = vand.u32 4294901760, %v705_v58  ;;  %v740_v13 = vand.u32 4294901760, %v44_v60  ;;  %v743_v18 = vand.u32 4294901760, %v733_v7 }
  0x11   :  { %218 = vmatpush.msra.mxu2 %v617_v21  ;;  %268 = vmatpush.msra.mxu3 %v604_v17  ;;  %v745_v26 = vand.u32 4294901760, %v43_v1  ;;  %v146_v30 = vand.u32 4294901760, %v145_v61  ;;  %v157_v31 = vsub.f32 %v690_v52, %v156_v62  ;;  %v168_v32 = vand.u32 4294901760, %v720_v0 }
  0x12   :  { %123 = vmatpush.msra.mxu1 %v122_v49  ;;  %74 = vmatpush.msra.mxu0 %v623_v25  ;;  %v755_v36 = vsub.f32 %v45_v55, %v717_v63  ;;  %v174_v37 = vand.u32 4294901760, %v726_v6  ;;  %v152_v38 = vand.u32 4294901760, %v151_v8  ;;  %v163_v39 = vsub.f32 %v705_v58, %v162_v12 }
  0x13   :  { %221 = vmatpush.msra.mxu2 %v633_v29  ;;  %270 = vmatpush.msra.mxu3 %v623_v25  ;;  %v765_v42 = vsub.f32 %v44_v60, %v740_v13  ;;  %v92_v43 = vsub.f32 %v733_v7, %v743_v18  ;;  %v158_v44 = vand.u32 4294901760, %v157_v31  ;;  %v169_v47 = vsub.f32 %v720_v0, %v168_v32 }
  0x14   :  { %129 = vmatpush.msra.mxu1 %v128_v56  ;;  %76 = vmatpush.msra.mxu0 %v630_v28  ;;  %v180_v48 = vand.u32 4294901760, %v755_v36  ;;  %v777_v49 = vsub.f32 %v43_v1, %v745_v26  ;;  %v164_v53 = vand.u32 4294901760, %v163_v39  ;;  %v175_v55 = vsub.f32 %v726_v6, %v174_v37 }
  0x15   :  { %224 = vmatpush.msra.mxu2 %v660_v40  ;;  %272 = vmatpush.msra.mxu3 %v630_v28  ;;  %v186_v56 = vand.u32 4294901760, %v765_v42  ;;  %v170_v60 = vand.u32 4294901760, %v169_v47  ;;  %v40_v14 = vmul.f32 %v733_v7, %v733_v7  ;;  %vm420_vm0 = vcmask 31744  }
  0x16   :  { %135 = vmatpush.msra.mxu1 %v134_v59  ;;  %78 = vmatpush.msra.mxu0 %v649_v35  ;;  %v93_v59 = vand.u32 4294901760, %v92_v43  ;;  %v181_v61 = vsub.f32 %v755_v36, %v180_v48  ;;  %v192_v1 = vand.u32 4294901760, %v777_v49  ;;  %vm36_vm1 = vcmask 24576  }
  0x17   :  { %227 = vmatpush.msra.mxu2 %v675_v46  ;;  %274 = vmatpush.msra.mxu3 %v649_v35  ;;  %v187_v8 = vsub.f32 %v765_v42, %v186_v56 }
  0x18   :  { %141 = vmatpush.msra.mxu1 %v140_v2  ;;  %80 = vmatpush.msra.mxu0 %v672_v45  ;;  %v176_v2 = vand.u32 4294901760, %v175_v55  ;;  %v182_v31 = vand.u32 4294901760, %v181_v61 }
  0x19   :  { %230 = vmatpush.msra.mxu2 %v690_v52  ;;  %276 = vmatpush.msra.mxu3 %v672_v45  ;;  %v188_v39 = vand.u32 4294901760, %v187_v8 }
  0x1a   :  { %147 = vmatpush.msra.mxu1 %v146_v30  ;;  %82 = vmatpush.msra.mxu0 %v687_v51  ;;  %v94_v30 = vsub.f32 %v92_v43, %v93_v59 }
  0x1b   :  { %233 = vmatpush.msra.mxu2 %v705_v58  ;;  %278 = vmatpush.msra.mxu3 %v687_v51 }
  0x1c   :  { %153 = vmatpush.msra.mxu1 %v152_v38  ;;  %84 = vmatpush.msra.mxu0 %v695_v54  ;;  %v193_v38 = vsub.f32 %v777_v49, %v192_v1 }
  0x1d   :  { %236 = vmatpush.msra.mxu2 %v720_v0  ;;  %280 = vmatpush.msra.mxu3 %v695_v54 }
  0x1e   :  { %159 = vmatpush.msra.mxu1 %v158_v44  ;;  %86 = vmatpush.msra.mxu0 %v717_v63  ;;  %v95_v44 = vand.u32 4294901760, %v94_v30  ;;  %v194_v47 = vand.u32 4294901760, %v193_v38 }
  0x1f   :  { %239 = vmatpush.msra.mxu2 %v726_v6  ;;  %282 = vmatpush.msra.mxu3 %v717_v63 }
  0x20   :  { %165 = vmatpush.msra.mxu1 %v164_v53  ;;  %88 = vmatpush.msra.mxu0 %v740_v13 }
  0x21   :  { %242 = vmatpush.msra.mxu2 %v755_v36  ;;  %284 = vmatpush.msra.mxu3 %v740_v13 }
  0x22   :  { %171 = vmatpush.msra.mxu1 %v170_v60  ;;  %90 = vmatpush.msra.mxu0 %v745_v26 }
  0x23   :  { %245 = vmatpush.msra.mxu2 %v765_v42  ;;  %286 = vmatpush.msra.mxu3 %v745_v26 }
  0x24   :  { %297 = vmatpush.msrb.mxu0 %v102_v22  ;;  %177 = vmatpush.msra.mxu1 %v176_v2 }
  0x25   :  { %248 = vmatpush.msra.mxu2 %v777_v49  ;;  %290 = vmatmul.f32.vlgmr.msra.gmra.mxu3 %v93_v59 }
  0x26   :  { %301 = vmatpush.msrb.mxu0 %v108_v23  ;;  %183 = vmatpush.msra.mxu1 %v182_v31 }
  0x27   :  { %251 = vmatmul.f32.vlgmr.msra.gmra.mxu2 %v92_v43  ;;  %96 = vmatmul.f32.vlgmr.msra.gmra.mxu0 %v95_v44 }
  0x28   :  { %305 = vmatpush.msrb.mxu0 %v114_v24  ;;  %189 = vmatpush.msra.mxu1 %v188_v39 }
  0x29   :  { %41 = vadd.xlane.f32.xlu0 %v40_v14 }
  0x2a   :  { %309 = vmatpush.msrb.mxu0 %v120_v27  ;;  %195 = vmatpush.msra.mxu1 %v194_v47 }
  0x2b   :  { %197 = vmatmul.f32.vlgmr.msra.gmra.mxu1 %v743_v18 }
  0x2c   :  { %364 = vmatpush.msrb.mxu1 %v567_v3  ;;  %313 = vmatpush.msrb.mxu0 %v126_v33 }
  0x2e   :  { %366 = vmatpush.msrb.mxu1 %v569_v4  ;;  %317 = vmatpush.msrb.mxu0 %v132_v34 }
  0x30   :  { %368 = vmatpush.msrb.mxu1 %v571_v5  ;;  %321 = vmatpush.msrb.mxu0 %v138_v41 }
  0x32   :  { %370 = vmatpush.msrb.mxu1 %v582_v9  ;;  %325 = vmatpush.msrb.mxu0 %v144_v50  ;;  %v536_v50 = vmov 0.0  }
  0x33   :  { %37 = vst.msk [vmem:[#allocation2] sm:$0x1] %vm36_vm1, %v536_v50 }
  0x34   :  { %372 = vmatpush.msrb.mxu1 %v584_v10  ;;  %329 = vmatpush.msrb.mxu0 %v150_v57 }
  0x36   :  { %374 = vmatpush.msrb.mxu1 %v586_v11  ;;  %333 = vmatpush.msrb.mxu0 %v156_v62 }
  0x38   :  { %376 = vmatpush.msrb.mxu1 %v604_v17  ;;  %337 = vmatpush.msrb.mxu0 %v162_v12  ;;  %v503_v17 = vld [vmem:[%s865_s0] ss:$0 sm:$0xff]  ;;  %s537_s0 = smov [#allocation3]  }
  0x39   :  { %s482_s19 = sshll.u32 %s537_s0, 4  ;;  %s483_s19 = int_to_ptr.vmem [resolvable:$true] %s482_s19 }
  0x3a   :  { %378 = vmatpush.msrb.mxu1 %v623_v25  ;;  %341 = vmatpush.msrb.mxu0 %v168_v32 }
  0x3c   :  { %380 = vmatpush.msrb.mxu1 %v630_v28  ;;  %345 = vmatpush.msrb.mxu0 %v174_v37 }
  0x3e   :  { %382 = vmatpush.msrb.mxu1 %v649_v35  ;;  %349 = vmatpush.msrb.mxu0 %v180_v48 }
  0x40   :  { %384 = vmatpush.msrb.mxu1 %v672_v45  ;;  %353 = vmatpush.msrb.mxu0 %v186_v56 }
  0x42   :  { %386 = vmatpush.msrb.mxu1 %v687_v51  ;;  %357 = vmatpush.msrb.mxu0 %v192_v1  ;;  %v446_v1 = vld [vmem:[#allocation2] sm:$0x1] }
  0x43   :  { %359 = vmatmul.f32.vlgmr.msrb.gmra.mxu0 %v743_v18 }
  0x44   :  { %388 = vmatpush.msrb.mxu1 %v695_v54 }
  0x46   :  { %390 = vmatpush.msrb.mxu1 %v717_v63 }
  0x48   :  { %392 = vmatpush.msrb.mxu1 %v740_v13 }
  0x4a   :  { %394 = vmatpush.msrb.mxu1 %v745_v26 }
  0x4b   :  { %396 = vmatmul.f32.vlgmr.msrb.gmra.mxu1 %v743_v18 }
  0x9c   :  { %v42_v19 = vpop.xlane.xlu0 %41 }
  0x9d   :  { %v403_v23 = vadd.f32 %v503_v17, %v42_v19 }
  0xa4   :  { %v97_v4 = vpop.f32.mrf.mxu0 }
  0xa8   :  { %v198_v3 = vpop.f32.mrf.mxu1  ;;  %v291_v11 = vpop.f32.mrf.mxu3 }
  0xa9   :  { %v199_v5 = vadd.f32 %v198_v3, %v97_v4 }
  0xaa   :  { %v252_v9 = vpop.f32.mrf.mxu2 }
  0xab   :  { %v253_v10 = vadd.f32 %v252_v9, %v199_v5  ;;  %v460_v5 = vlaneseq }
  0xad   :  { %v292_v15 = vadd.f32 %v291_v11, %v253_v10  ;;  %v461_v9 = vand.u32 127, %v460_v5 }
  0xaf   :  { %vm462_vm8 = vcmp.eq.s32.totalorder %v461_v9, 0 }
  0xc0   :  { %v360_v16 = vpop.f32.mrf.mxu0 }
  0xc1   :  { %v361_v20 = vadd.f32 %v360_v16, %v292_v15 }
  0xc8   :  { %v397_v21 = vpop.f32.mrf.mxu1 }
  0xc9   :  { %v398_v22 = vadd.f32 %v397_v21, %v361_v20 }
  0xcb   :  { %v404_v24 = vmul.f32 2.0, %v398_v22 }
  0xcd   :  { %v405_v25 = vsub.f32 %v403_v23, %v404_v24 }
  0xcf   :  { %v406_v27 = vmax.f32 %v405_v25, 0.0 }
  0xd1   :  { %v419_v28 = vsub.f32 0.0, %v406_v27  ;;  %vm414_vm4 = vcmp.eq.f32.partialorder %v406_v27, inf  ;;  %v417_v37 = vand.u32 2147483648, %v406_v27  ;;  %vm416_vm7 = vcmp.eq.f32.partialorder %v406_v27, 0.0 }
  0xd3   :  { %v421_v29 = vsel %vm420_vm0, %v419_v28, -inf }
  0xd4   :  { %422 = vmax.xlane.f32.xlu0 %v421_v29 }
 0x147   :  { %v423_v33 = vpop.xlane.xlu0 %422 }
 0x148   :  { %v424_v34 = vsub.f32 %v419_v28, %v423_v33 }
 0x14a   :  { %v425_v35 = vmul.f32 1.442695, %v424_v34 }
 0x14c   :  { %504 = vpow2.f32 %v425_v35 }
 0x14d   :  { %506 = vrsqrt.f32 %v406_v27 }
 0x152   :  { %v505_v40 = vpop.eup %504 }
 0x153   :  { %v427_v41 = vsel %vm420_vm0, %v505_v40, 0.0  ;;  %v507_v45 = vpop.eup %506 }
 0x154   :  { %428 = vadd.xlane.f32.xlu1 %v427_v41  ;;  %v408_v46 = vmul.f32 %v507_v45, %v406_v27 }
 0x156   :  { %v409_v51 = vmul.f32 %v507_v45, %v408_v46 }
 0x158   :  { %v410_v54 = vmul.f32 0.5, %v409_v51 }
 0x15a   :  { %v411_v57 = vsub.f32 1.5, %v410_v54 }
 0x15c   :  { %v412_v62 = vmul.f32 %v507_v45, %v411_v57 }
 0x15e   :  { %v413_v7 = vmul.f32 %v412_v62, %v406_v27 }
 0x160   :  { %v415_v32 = vsel %vm414_vm4, %v406_v27, %v413_v7 }
 0x161   :  { %v418_v48 = vsel %vm416_vm7, %v417_v37, %v415_v32 }
 0x1c7   :  { %v429_v52 = vpop.xlane.xlu1 %428 }
 0x1c8   :  { %508 = vrcp.f32 %v429_v52  ;;  %v441_v6 = vand.u32 2147483648, %v429_v52  ;;  %v439_v13 = vand.u32 2147483647, %v429_v52  ;;  %vm435_vm3 = vweird.f32 %v429_v52 }
 0x1ca   :  { %v442_v26 = vor.u32 1.1754944e-38, %v441_v6  ;;  %vm440_vm6 = vcmp.eq.f32.partialorder %v439_v13, 8.507059e+37 }
 0x1ce   :  { %v509_v58 = vpop.eup %508 }
 0x1cf   :  { %v431_v63 = vmul.f32 %v509_v58, %v429_v52  ;;  %vm436_vm2 = vweird.f32 %v509_v58 }
 0x1d0   :  { %vm437_vm5 = vmor %vm435_vm3, %vm436_vm2 }
 0x1d1   :  { %v432_v0 = vsub.f32 1.0, %v431_v63 }
 0x1d3   :  { %v433_v12 = vmul.f32 %v509_v58, %v432_v0 }
 0x1d5   :  { %v434_v18 = vadd.f32 %v509_v58, %v433_v12 }
 0x1d7   :  { %v438_v36 = vsel %vm437_vm5, %v509_v58, %v434_v18 }
 0x1d8   :  { %v443_v42 = vsel %vm440_vm6, %v442_v26, %v438_v36 }
 0x1d9   :  { %v444_v43 = vmul.f32 %v505_v40, %v443_v42 }
 0x1db   :  { %v445_v49 = vmul.f32 %v444_v43, %v418_v48 }
 0x1dd   :  { %v447_v53 = vsel %vm420_vm0, %v445_v49, 0.0 }
 0x1de   :  { %v448_v55 = vrot.slane %v447_v53, 4 }
 0x1e0   :  { %v449_v56 = vadd.f32 %v448_v55, %v447_v53 }
 0x1e2   :  { %v450_v59 = vrot.slane %v449_v56, 2 }
 0x1e4   :  { %v451_v60 = vadd.f32 %v450_v59, %v449_v56 }
 0x1e6   :  { %v452_v61 = vrot.slane %v451_v60, 1 }
 0x1e8   :  { %v453_v2 = vadd.f32 %v452_v61, %v451_v60 }
 0x1ea   :  { %v454_v8 = vadd.f32 %v453_v2, %v446_v1 }
 0x1ec   :  { %456 = vst.msk [vmem:[#allocation2] sm:$0x1] %vm36_vm1, %v454_v8 }
 0x1f3   :  { %v463_v30 = vld [vmem:[#allocation2] sm:$0x1] }
 0x1f4   :  { %v464_v31 = vsel %vm36_vm1, %v463_v30, 0.0 }
 0x1f5   :  { %465 = vadd.xlane.f32.xlu1 %v464_v31 }
 0x268   :  { %v466_v38 = vpop.xlane.xlu1 %465 }
 0x269   :  { %v467_v39 = vrot.slane %v466_v38, 4 }
 0x26b   :  { %v468_v44 = vadd.f32 %v467_v39, %v466_v38 }
 0x26d   :  { %v469_v47 = vrot.slane %v468_v44, 2 }
 0x26f   :  { %v470_v14 = vadd.f32 %v469_v47, %v468_v44 }
 0x271   :  { %v471_v3 = vrot.slane %v470_v14, 1 }
 0x273   :  { %v472_v4 = vadd.f32 %v471_v3, %v470_v14 }
 0x275   :  { %499 = vpush %v472_v4 }
 0x2a6   :  { %s500_s23 = spop %499 }
 0x2a7   :  { %v474_v10 = vstv %s500_s23 }
 0x2a8   :  { %v475_v11 = vsel %vm462_vm8, %v474_v10, 0.0 }
 0x2a9   :  { %476 = vst [vmem:[#allocation3] sm:$0x1] %v475_v11 }
 0x2aa   :  { %487 = dma.vmem_to_hbm [thread:$0]  %s483_s19, 16, %s485_s22, [#allocation4]  }
 0x2ab   :  { %534 = dma.done.wait [#allocation4], 16  }
 0x2ac   :  { %535 = vsyncadd [#allocation4], 4294967280 }
 0x2ad   :  { %492 = vsyncpa [#allocation4], 1 }

</bundles_post_ra>
